<compile_context>
chip_gen: v6e
topology: v6e:2x2x1
jax: 0.10.0
libtpu: 0.0.40
codegen_flags: <defaults>
</compile_context>

<pallas_src>
import functools

import numpy as np
import jax
import jax.numpy as jnp
from jax import lax
from jax.experimental import pallas as pl
from jax.experimental.pallas import tpu as pltpu


_CONTRACT_MINOR = (((1,), (1,)), ((), ()))        # A[., k] contracted with B[., k]  (A @ B^T)


def _round_up(x, m):
    return ((x + m - 1) // m) * m


# --------------------------------------------------------------------------- #
# Training-path kernel: coupling forward + analytic path gradient, one batch tile.
# --------------------------------------------------------------------------- #
def _coupling_path_train_kernel(z_ref, dlq_ref, mt_ref, w1_ref, b1_ref,
                                w2s_ref, w2t_ref, b2s_ref, b2t_ref, mtw2s_ref,
                                x_ref, cld_ref, dldx_ref):
    z = z_ref[...]            # [Bt, N]
    dlq = dlq_ref[...]        # [Bt, N]
    mt = mt_ref[...]          # [1, N]   active (transformed) mask
    mc = 1.0 - mt             # [1, N]   conditioning mask
    w1 = w1_ref[...]          # [N, Hd]
    w2s = w2s_ref[...]        # [Hd, N]  (== W2[:, :N])
    w2t = w2t_ref[...]        # [Hd, N]  (== W2[:, N:])
    mtw2s = mtw2s_ref[...]    # [1, Hd]  == m_trans @ W2_s^T  (hoisted constant)

    # ---- coupling forward: (s, t) = MLP(z * m_cond) -------------------------
    zc = z * mc
    h = jnp.tanh(jnp.dot(zc, w1, preferred_element_type=jnp.float32) + b1_ref[...])   # [Bt, Hd]
    s = (jnp.dot(h, w2s, preferred_element_type=jnp.float32) + b2s_ref[...]) * mt     # [Bt, N]
    t = (jnp.dot(h, w2t, preferred_element_type=jnp.float32) + b2t_ref[...]) * mt     # [Bt, N]
    exp_s = jnp.exp(s)

    x = z * mc + (z * exp_s) * mt + t          # t already masked -> no extra *mt
    c_log_det = jnp.sum(s, axis=1, keepdims=True)                                     # [Bt, 1]

    # ---- analytic path gradient ---------------------------------------------
    one_m_h2 = 1.0 - h * h
    # ddldz_cond pre-image: g_h = -(1-h^2) * (mt @ W2_s^T)   (1-row matmul hoisted to wrapper)
    g_h = -(one_m_h2 * mtw2s)                                                          # [Bt, Hd]
    mtdlq = mt * dlq
    # dLdx_trans = m_t * dlq / exp(s)  ->  multiply by exp(-s) (EUP slot, exact)
    dldx_trans = mtdlq * jnp.exp(-s)                                                   # [Bt, N]
    # VJP of x_trans wrt (s, t): cot_s = dLdx_trans*z*exp(s) == mt*dlq*z (exp cancels),
    # cot_t = dLdx_trans.  Two K=N contractions against the pre-split W2 halves
    # (no (Bt, 2N) concat copy).
    cot_h = one_m_h2 * (
        lax.dot_general(mtdlq * z, w2s, _CONTRACT_MINOR, preferred_element_type=jnp.float32)
        + lax.dot_general(dldx_trans, w2t, _CONTRACT_MINOR, preferred_element_type=jnp.float32))
    # dLdx_cond = mc*dlq - ddx_trans/dz_cond + ddldz_cond
    #           = mc*(dlq + (g_h - cot_h) @ W1^T)             (single matmul)
    back = lax.dot_general(g_h - cot_h, w1, _CONTRACT_MINOR,
                           preferred_element_type=jnp.float32)                        # [Bt, N]
    dldx = mc * (dlq + back) + dldx_trans                                              # join(cond, trans)

    x_ref[...] = x
    cld_ref[...] = c_log_det
    dldx_ref[...] = dldx


# --------------------------------------------------------------------------- #
# Eval-mode kernel (dlogqdz is None): forward only, no backward matmuls.
# --------------------------------------------------------------------------- #
def _coupling_eval_kernel(z_ref, mt_ref, w1_ref, b1_ref, w2s_ref, w2t_ref,
                          b2s_ref, b2t_ref, x_ref, cld_ref):
    z = z_ref[...]            # [Bt, N]
    mt = mt_ref[...]          # [1, N]
    mc = 1.0 - mt

    zc = z * mc
    h = jnp.tanh(jnp.dot(zc, w1_ref[...], preferred_element_type=jnp.float32) + b1_ref[...])
    s = (jnp.dot(h, w2s_ref[...], preferred_element_type=jnp.float32) + b2s_ref[...]) * mt
    t = (jnp.dot(h, w2t_ref[...], preferred_element_type=jnp.float32) + b2t_ref[...]) * mt

    x_ref[...] = z * mc + (z * jnp.exp(s)) * mt + t
    cld_ref[...] = jnp.sum(s, axis=1, keepdims=True)


# --------------------------------------------------------------------------- #
# Wrapper: flattening, batch tiling, parameter plumbing, pallas_call (jit'ed).
# --------------------------------------------------------------------------- #
@functools.partial(jax.jit, static_argnames=("b_tile",))
def u1_coupling_path_forward(z, dlogqdz, params, m_trans, *, b_tile=256):
    """Mirrors U1CouplingPathWrapper.forward for the synthetic masked-affine coupling.

    Training path (dlogqdz given) returns (x, c_log_det, dLdx); eval path
    (dlogqdz=None) returns (x, c_log_det) via a forward-only kernel."""
    B = z.shape[0]
    N = int(np.prod(z.shape[1:]))
    W1, b1, W2, b2 = params["W1"], params["b1"], params["W2"], params["b2"]
    Hd = W1.shape[1]

    # Batch rows are independent: tile the grid over them.  Keep >= 2 grid
    # steps when B allows it so both v7x TensorCores get work ("parallel" axis).
    bt = _round_up(min(int(b_tile), max(B, 8)), 8)
    if B > 8:
        bt = min(bt, _round_up((B + 1) // 2, 8))
    B_pad = _round_up(B, bt)
    n_tiles = B_pad // bt

    zf = z.reshape(B, N).astype(jnp.float32)
    if B_pad != B:
        zf = jnp.pad(zf, ((0, B_pad - B), (0, 0)))
    mt = m_trans.reshape(1, N).astype(jnp.float32)
    W1f = W1.astype(jnp.float32)
    b1f = b1.reshape(1, Hd).astype(jnp.float32)
    W2f = W2.astype(jnp.float32)
    # Pre-split W2/b2 into the s/t halves (static, 128-aligned): avoids any
    # in-kernel slicing and the (bt, 2N) cotangent concat in the backward.
    w2s, w2t = W2f[:, :N], W2f[:, N:]
    b2s = b2[:N].reshape(1, N).astype(jnp.float32)
    b2t = b2[N:].reshape(1, N).astype(jnp.float32)

    def const_spec(shape):
        nd = len(shape)
        return pl.BlockSpec(shape, lambda i, _nd=nd: (0,) * _nd)   # VMEM-resident constants

    row_spec = pl.BlockSpec((bt, N), lambda i: (i, 0))
    cld_spec = pl.BlockSpec((bt, 1), lambda i: (i, 0))             # tiny contiguous DMA, no 128x inflate
    cparams = pltpu.CompilerParams(dimension_semantics=("parallel",))

    if dlogqdz is None:
        # Eval fast path: no dlq DMA, no backward work.
        args = (zf, mt, W1f, b1f, w2s, w2t, b2s, b2t)
        x, cld = pl.pallas_call(
            _coupling_eval_kernel,
            grid=(n_tiles,),
            in_specs=[row_spec] + [const_spec(a.shape) for a in args[1:]],
            out_specs=[row_spec, cld_spec],
            out_shape=(jax.ShapeDtypeStruct((B_pad, N), jnp.float32),
                       jax.ShapeDtypeStruct((B_pad, 1), jnp.float32)),
            compiler_params=cparams,
        )(*args)
        return x[:B].reshape(z.shape), cld[:B, 0]

    dlqf = dlogqdz.reshape(B, N).astype(jnp.float32)
    if B_pad != B:
        dlqf = jnp.pad(dlqf, ((0, B_pad - B), (0, 0)))

    # Input-independent hoist: m_trans @ W2_s^T (a 1-row matmul the MXU hates);
    # constant-folded / fused under jit.
    mtw2s = jnp.matmul(mt, w2s.T, precision=jax.lax.Precision.HIGHEST)       # [1, Hd]

    args = (zf, dlqf, mt, W1f, b1f, w2s, w2t, b2s, b2t, mtw2s)
    x, cld, dldx = pl.pallas_call(
        _coupling_path_train_kernel,
        grid=(n_tiles,),
        in_specs=[row_spec, row_spec] + [const_spec(a.shape) for a in args[2:]],
        out_specs=[row_spec, cld_spec, row_spec],
        out_shape=(jax.ShapeDtypeStruct((B_pad, N), jnp.float32),
                   jax.ShapeDtypeStruct((B_pad, 1), jnp.float32),
                   jax.ShapeDtypeStruct((B_pad, N), jnp.float32)),
        compiler_params=cparams,
    )(*args)
    return x[:B].reshape(z.shape), cld[:B, 0], dldx[:B].reshape(z.shape)


# --------------------------------------------------------------------------- #
# Pure-JAX reference mirroring the PyTorch code (autodiff instead of analytic).
# --------------------------------------------------------------------------- #
def _reference_forward(z, dlogqdz, params, m_trans_np):
    B = z.shape[0]
    N = int(np.prod(z.shape[1:]))
    W1, b1, W2, b2 = (params["W1"], params["b1"], params["W2"], params["b2"])
    zf = z.reshape(B, N).astype(jnp.float32)
    dlqf = dlogqdz.reshape(B, N).astype(jnp.float32)
    mt = jnp.asarray(m_trans_np.reshape(-1), jnp.float32)
    mc = 1.0 - mt
    cond_idx = np.where(m_trans_np.reshape(-1) < 0.5)[0]
    trans_idx = np.where(m_trans_np.reshape(-1) > 0.5)[0]
    P = jax.lax.Precision.HIGHEST

    def coupling(zflat):
        zc = zflat * mc
        h = jnp.tanh(jnp.dot(zc, W1, precision=P) + b1)
        out = jnp.dot(h, W2, precision=P) + b2
        s = out[:, :N] * mt
        t = out[:, N:] * mt
        x = zflat * mc + (zflat * jnp.exp(s) + t) * mt
        return x, s                    # (x, c_log_det_d)

    def split(a):
        return a[:, cond_idx], a[:, trans_idx]

    def join(ac, at):
        a = jnp.zeros((B, N), jnp.float32)
        return a.at[:, cond_idx].set(ac).at[:, trans_idx].set(at)

    cond_z, trans_z = split(zf)
    dlq_cond, dlq_trans = split(dlqf)

    def f(cz, tz):
        return coupling(join(cz, tz))

    x, cldd = f(cond_z, trans_z)
    c_log_det = cldd.sum(1)
    cldd_sel = cldd[:, trans_idx]
    dx_transdz_trans = jnp.exp(cldd_sel)

    ddldz = jax.grad(lambda cz, tz: -f(cz, tz)[1].sum(), argnums=(0, 1))(cond_z, trans_z)
    dLdx_trans = (dlq_trans + ddldz[1]) / dx_transdz_trans

    _, vjp_fn = jax.vjp(lambda cz: f(cz, trans_z)[0][:, trans_idx], cond_z)
    ddx_transdz_cond = vjp_fn(dLdx_trans)[0]
    dLdx_cond = dlq_cond - ddx_transdz_cond + ddldz[0]
    dLdx = join(dLdx_cond, dLdx_trans)
    return x.reshape(z.shape), c_log_det, dLdx.reshape(z.shape)


# --------------------------------------------------------------------------- #
if __name__ == "__main__":
    # U(1) in 2D: 2 link directions on an 8x8 lattice -> N = 128 (one lane row).
    B, C, H, W_sp = 64, 2, 8, 8
    N = C * H * W_sp                    # 128
    Hd = 32                             # conditioner hidden width
    B_TILE = 32                         # -> 2 grid steps here (both v7x TCs busy); sweep up on v5e/v6e

    key = jax.random.PRNGKey(0)
    k1, k2, k3, k4, kz, kd = jax.random.split(key, 6)
    params = {
        "W1": 0.05 * jax.random.normal(k1, (N, Hd), jnp.float32),
        "b1": 0.05 * jax.random.normal(k2, (Hd,), jnp.float32),
        "W2": 0.05 * jax.random.normal(k3, (Hd, 2 * N), jnp.float32),
        "b2": 0.05 * jax.random.normal(k4, (2 * N,), jnp.float32),
    }
    z = jax.random.normal(kz, (B, C, H, W_sp), jnp.float32)
    dlogqdz = jax.random.normal(kd, (B, C, H, W_sp), jnp.float32)

    # active_mask (m_trans): checkerboard over (C, H, W) — deterministic, half/half.
    cc, hh, ww = np.meshgrid(np.arange(C), np.arange(H), np.arange(W_sp), indexing="ij")
    m_trans_np = ((cc + hh + ww) % 2).astype(np.float32)
    m_trans = jnp.asarray(m_trans_np)

    # training path (path gradient)
    x, c_log_det, dLdx = u1_coupling_path_forward(z, dlogqdz, params, m_trans, b_tile=B_TILE)
    jax.block_until_ready((x, c_log_det, dLdx))

    # correctness check against the autodiff reference (mirrors the PyTorch code)
    xr, cldr, dLdxr = _reference_forward(z, dlogqdz, params, m_trans_np)
    assert np.allclose(np.asarray(x), np.asarray(xr), rtol=1e-3, atol=1e-3)
    assert np.allclose(np.asarray(c_log_det), np.asarray(cldr), rtol=1e-3, atol=1e-3)
    assert np.allclose(np.asarray(dLdx), np.asarray(dLdxr), rtol=1e-3, atol=1e-3)

    # eval-mode fast path (dlogqdz is None): forward-only kernel.
    xe, clde = u1_coupling_path_forward(z, None, params, m_trans, b_tile=B_TILE)
    jax.block_until_ready((xe, clde))
    assert np.allclose(np.asarray(xe), np.asarray(xr), rtol=1e-3, atol=1e-3)
    assert np.allclose(np.asarray(clde), np.asarray(cldr), rtol=1e-3, atol=1e-3)

    # TODO(synk): coupling.reverse / reverse-piggyback path raises NotImplementedError
    # in the original module and is not implemented here either.
    print("KERNEL_OK")
</pallas_src>

<mosaic_0001>
module attributes {stable_mosaic.version = 11 : i64} {
  func.func @_coupling_path_train_kernel(%arg0: i32, %arg1: memref<32x128xf32, #tpu.memory_space<vmem>>, %arg2: memref<32x128xf32, #tpu.memory_space<vmem>>, %arg3: memref<1x128xf32, #tpu.memory_space<vmem>>, %arg4: memref<128x32xf32, #tpu.memory_space<vmem>>, %arg5: memref<1x32xf32, #tpu.memory_space<vmem>>, %arg6: memref<32x128xf32, #tpu.memory_space<vmem>>, %arg7: memref<32x128xf32, #tpu.memory_space<vmem>>, %arg8: memref<1x128xf32, #tpu.memory_space<vmem>>, %arg9: memref<1x128xf32, #tpu.memory_space<vmem>>, %arg10: memref<1x32xf32, #tpu.memory_space<vmem>>, %arg11: memref<32x128xf32, #tpu.memory_space<vmem>>, %arg12: memref<32x1xf32, #tpu.memory_space<vmem>>, %arg13: memref<32x128xf32, #tpu.memory_space<vmem>>) attributes {dimension_semantics = [#tpu.dimension_semantics<parallel>], iteration_bounds = array<i64: 2>, scalar_prefetch = 0 : i64, scratch_operands = 0 : i64, tpu.core_type = #tpu.core_type<tc>, window_params = [{transform_indices = @transform_0, window_bounds = array<i64: 32, 128>}, {transform_indices = @transform_1, window_bounds = array<i64: 32, 128>}, {pipeline_mode = #tpu.pipeline_mode<synchronous>, transform_indices = @transform_2, window_bounds = array<i64: 1, 128>}, {pipeline_mode = #tpu.pipeline_mode<synchronous>, transform_indices = @transform_3, window_bounds = array<i64: 128, 32>}, {pipeline_mode = #tpu.pipeline_mode<synchronous>, transform_indices = @transform_4, window_bounds = array<i64: 1, 32>}, {pipeline_mode = #tpu.pipeline_mode<synchronous>, transform_indices = @transform_5, window_bounds = array<i64: 32, 128>}, {pipeline_mode = #tpu.pipeline_mode<synchronous>, transform_indices = @transform_6, window_bounds = array<i64: 32, 128>}, {pipeline_mode = #tpu.pipeline_mode<synchronous>, transform_indices = @transform_7, window_bounds = array<i64: 1, 128>}, {pipeline_mode = #tpu.pipeline_mode<synchronous>, transform_indices = @transform_8, window_bounds = array<i64: 1, 128>}, {pipeline_mode = #tpu.pipeline_mode<synchronous>, transform_indices = @transform_9, window_bounds = array<i64: 1, 32>}, {transform_indices = @transform_10, window_bounds = array<i64: 32, 128>}, {transform_indices = @transform_11, window_bounds = array<i64: 32, 1>}, {transform_indices = @transform_12, window_bounds = array<i64: 32, 128>}]} {
    %c0 = arith.constant 0 : index
    %c0_0 = arith.constant 0 : index
    %0 = vector.load %arg1[%c0, %c0_0] : memref<32x128xf32, #tpu.memory_space<vmem>>, vector<32x128xf32>
    %c0_1 = arith.constant 0 : index
    %c0_2 = arith.constant 0 : index
    %1 = vector.load %arg2[%c0_1, %c0_2] : memref<32x128xf32, #tpu.memory_space<vmem>>, vector<32x128xf32>
    %c0_3 = arith.constant 0 : index
    %c0_4 = arith.constant 0 : index
    %2 = vector.load %arg3[%c0_3, %c0_4] : memref<1x128xf32, #tpu.memory_space<vmem>>, vector<1x128xf32>
    %cst = arith.constant 1.000000e+00 : f32
    %3 = vector.broadcast %cst : f32 to vector<1x128xf32>
    %4 = arith.subf %3, %2 : vector<1x128xf32>
    %c0_5 = arith.constant 0 : index
    %c0_6 = arith.constant 0 : index
    %5 = vector.load %arg4[%c0_5, %c0_6] : memref<128x32xf32, #tpu.memory_space<vmem>>, vector<128x32xf32>
    %c0_7 = arith.constant 0 : index
    %c0_8 = arith.constant 0 : index
    %6 = vector.load %arg6[%c0_7, %c0_8] : memref<32x128xf32, #tpu.memory_space<vmem>>, vector<32x128xf32>
    %c0_9 = arith.constant 0 : index
    %c0_10 = arith.constant 0 : index
    %7 = vector.load %arg7[%c0_9, %c0_10] : memref<32x128xf32, #tpu.memory_space<vmem>>, vector<32x128xf32>
    %c0_11 = arith.constant 0 : index
    %c0_12 = arith.constant 0 : index
    %8 = vector.load %arg10[%c0_11, %c0_12] : memref<1x32xf32, #tpu.memory_space<vmem>>, vector<1x32xf32>
    %9 = vector.broadcast %4 : vector<1x128xf32> to vector<32x128xf32>
    %10 = arith.mulf %0, %9 : vector<32x128xf32>
    %cst_13 = arith.constant dense<0.000000e+00> : vector<32x32xf32>
    %11 = tpu.matmul %10, %5, %cst_13 {dimension_numbers = #tpu.dot_dimension_numbers<[1], [0], [0], [1], [0, 0, 1, 1], [], []>} : vector<32x128xf32>, vector<128x32xf32>, vector<32x32xf32> -> vector<32x32xf32>
    %c0_14 = arith.constant 0 : index
    %c0_15 = arith.constant 0 : index
    %12 = vector.load %arg5[%c0_14, %c0_15] : memref<1x32xf32, #tpu.memory_space<vmem>>, vector<1x32xf32>
    %13 = vector.broadcast %12 : vector<1x32xf32> to vector<32x32xf32>
    %14 = arith.addf %11, %13 : vector<32x32xf32>
    %15 = math.tanh %14 : vector<32x32xf32>
    %cst_16 = arith.constant dense<0.000000e+00> : vector<32x128xf32>
    %16 = tpu.matmul %15, %6, %cst_16 {dimension_numbers = #tpu.dot_dimension_numbers<[1], [0], [0], [1], [0, 0, 1, 1], [], []>} : vector<32x32xf32>, vector<32x128xf32>, vector<32x128xf32> -> vector<32x128xf32>
    %c0_17 = arith.constant 0 : index
    %c0_18 = arith.constant 0 : index
    %17 = vector.load %arg8[%c0_17, %c0_18] : memref<1x128xf32, #tpu.memory_space<vmem>>, vector<1x128xf32>
    %18 = vector.broadcast %17 : vector<1x128xf32> to vector<32x128xf32>
    %19 = arith.addf %16, %18 : vector<32x128xf32>
    %20 = vector.broadcast %2 : vector<1x128xf32> to vector<32x128xf32>
    %21 = arith.mulf %19, %20 : vector<32x128xf32>
    %cst_19 = arith.constant dense<0.000000e+00> : vector<32x128xf32>
    %22 = tpu.matmul %15, %7, %cst_19 {dimension_numbers = #tpu.dot_dimension_numbers<[1], [0], [0], [1], [0, 0, 1, 1], [], []>} : vector<32x32xf32>, vector<32x128xf32>, vector<32x128xf32> -> vector<32x128xf32>
    %c0_20 = arith.constant 0 : index
    %c0_21 = arith.constant 0 : index
    %23 = vector.load %arg9[%c0_20, %c0_21] : memref<1x128xf32, #tpu.memory_space<vmem>>, vector<1x128xf32>
    %24 = vector.broadcast %23 : vector<1x128xf32> to vector<32x128xf32>
    %25 = arith.addf %22, %24 : vector<32x128xf32>
    %26 = vector.broadcast %2 : vector<1x128xf32> to vector<32x128xf32>
    %27 = arith.mulf %25, %26 : vector<32x128xf32>
    %28 = math.exp %21 : vector<32x128xf32>
    %29 = vector.broadcast %4 : vector<1x128xf32> to vector<32x128xf32>
    %30 = arith.mulf %0, %29 : vector<32x128xf32>
    %31 = arith.mulf %0, %28 : vector<32x128xf32>
    %32 = vector.broadcast %2 : vector<1x128xf32> to vector<32x128xf32>
    %33 = arith.mulf %31, %32 : vector<32x128xf32>
    %34 = arith.addf %30, %33 : vector<32x128xf32>
    %35 = arith.addf %34, %27 : vector<32x128xf32>
    %cst_22 = arith.constant dense<0.000000e+00> : vector<32xf32>
    %36 = vector.multi_reduction <add>, %21, %cst_22 [1] : vector<32x128xf32> to vector<32xf32>
    %37 = vector.shape_cast %36 : vector<32xf32> to vector<32x1xf32>
    %38 = arith.mulf %15, %15 : vector<32x32xf32>
    %cst_23 = arith.constant 1.000000e+00 : f32
    %39 = vector.broadcast %cst_23 : f32 to vector<32x32xf32>
    %40 = arith.subf %39, %38 : vector<32x32xf32>
    %41 = vector.broadcast %8 : vector<1x32xf32> to vector<32x32xf32>
    %42 = arith.mulf %40, %41 : vector<32x32xf32>
    %cst_24 = arith.constant 0.000000e+00 : f32
    %43 = vector.broadcast %cst_24 : f32 to vector<32x32xf32>
    %44 = arith.subf %43, %42 : vector<32x32xf32>
    %45 = vector.broadcast %2 : vector<1x128xf32> to vector<32x128xf32>
    %46 = arith.mulf %45, %1 : vector<32x128xf32>
    %cst_25 = arith.constant 0.000000e+00 : f32
    %47 = vector.broadcast %cst_25 : f32 to vector<32x128xf32>
    %48 = arith.subf %47, %21 : vector<32x128xf32>
    %49 = math.exp %48 : vector<32x128xf32>
    %50 = arith.mulf %46, %49 : vector<32x128xf32>
    %51 = arith.mulf %46, %0 : vector<32x128xf32>
    %cst_26 = arith.constant dense<0.000000e+00> : vector<32x32xf32>
    %52 = tpu.matmul %51, %6, %cst_26 {dimension_numbers = #tpu.dot_dimension_numbers<[1], [1], [0], [0], [0, 0, 1, 0], [], []>} : vector<32x128xf32>, vector<32x128xf32>, vector<32x32xf32> -> vector<32x32xf32>
    %cst_27 = arith.constant dense<0.000000e+00> : vector<32x32xf32>
    %53 = tpu.matmul %50, %7, %cst_27 {dimension_numbers = #tpu.dot_dimension_numbers<[1], [1], [0], [0], [0, 0, 1, 0], [], []>} : vector<32x128xf32>, vector<32x128xf32>, vector<32x32xf32> -> vector<32x32xf32>
    %54 = arith.addf %52, %53 : vector<32x32xf32>
    %55 = arith.mulf %40, %54 : vector<32x32xf32>
    %56 = arith.subf %44, %55 : vector<32x32xf32>
    %cst_28 = arith.constant dense<0.000000e+00> : vector<32x128xf32>
    %57 = tpu.matmul %56, %5, %cst_28 {dimension_numbers = #tpu.dot_dimension_numbers<[1], [1], [0], [0], [0, 0, 1, 0], [], []>} : vector<32x32xf32>, vector<128x32xf32>, vector<32x128xf32> -> vector<32x128xf32>
    %58 = arith.addf %1, %57 : vector<32x128xf32>
    %59 = vector.broadcast %4 : vector<1x128xf32> to vector<32x128xf32>
    %60 = arith.mulf %59, %58 : vector<32x128xf32>
    %61 = arith.addf %60, %50 : vector<32x128xf32>
    %c0_29 = arith.constant 0 : index
    %c0_30 = arith.constant 0 : index
    %62 = vector.load %arg11[%c0_29, %c0_30] : memref<32x128xf32, #tpu.memory_space<vmem>>, vector<32x128xf32>
    tpu.vector_store %arg11[%c0_29, %c0_30], %35 {strides = array<i32>} : memref<32x128xf32, #tpu.memory_space<vmem>>, vector<32x128xf32>,
    %c0_31 = arith.constant 0 : index
    %c0_32 = arith.constant 0 : index
    %63 = vector.load %arg12[%c0_31, %c0_32] : memref<32x1xf32, #tpu.memory_space<vmem>>, vector<32x1xf32>
    tpu.vector_store %arg12[%c0_31, %c0_32], %37 {strides = array<i32>} : memref<32x1xf32, #tpu.memory_space<vmem>>, vector<32x1xf32>,
    %c0_33 = arith.constant 0 : index
    %c0_34 = arith.constant 0 : index
    %64 = vector.load %arg13[%c0_33, %c0_34] : memref<32x128xf32, #tpu.memory_space<vmem>>, vector<32x128xf32>
    tpu.vector_store %arg13[%c0_33, %c0_34], %61 {strides = array<i32>} : memref<32x128xf32, #tpu.memory_space<vmem>>, vector<32x128xf32>,
    return
  }
  func.func @transform_0(%arg0: i32) -> (i32, i32) {
    %c0_i32 = arith.constant 0 : i32
    %c0_i32_0 = arith.constant 0 : i32
    return %arg0, %c0_i32 : i32, i32
  }
  func.func @transform_1(%arg0: i32) -> (i32, i32) {
    %c0_i32 = arith.constant 0 : i32
    %c0_i32_0 = arith.constant 0 : i32
    return %arg0, %c0_i32 : i32, i32
  }
  func.func @transform_2(%arg0: i32) -> (i32, i32) {
    %c0_i32 = arith.constant 0 : i32
    %c0_i32_0 = arith.constant 0 : i32
    %c0_i32_1 = arith.constant 0 : i32
    return %c0_i32, %c0_i32_0 : i32, i32
  }
  func.func @transform_3(%arg0: i32) -> (i32, i32) {
    %c0_i32 = arith.constant 0 : i32
    %c0_i32_0 = arith.constant 0 : i32
    %c0_i32_1 = arith.constant 0 : i32
    return %c0_i32, %c0_i32_0 : i32, i32
  }
  func.func @transform_4(%arg0: i32) -> (i32, i32) {
    %c0_i32 = arith.constant 0 : i32
    %c0_i32_0 = arith.constant 0 : i32
    %c0_i32_1 = arith.constant 0 : i32
    return %c0_i32, %c0_i32_0 : i32, i32
  }
  func.func @transform_5(%arg0: i32) -> (i32, i32) {
    %c0_i32 = arith.constant 0 : i32
    %c0_i32_0 = arith.constant 0 : i32
    %c0_i32_1 = arith.constant 0 : i32
    return %c0_i32, %c0_i32_0 : i32, i32
  }
  func.func @transform_6(%arg0: i32) -> (i32, i32) {
    %c0_i32 = arith.constant 0 : i32
    %c0_i32_0 = arith.constant 0 : i32
    %c0_i32_1 = arith.constant 0 : i32
    return %c0_i32, %c0_i32_0 : i32, i32
  }
  func.func @transform_7(%arg0: i32) -> (i32, i32) {
    %c0_i32 = arith.constant 0 : i32
    %c0_i32_0 = arith.constant 0 : i32
    %c0_i32_1 = arith.constant 0 : i32
    return %c0_i32, %c0_i32_0 : i32, i32
  }
  func.func @transform_8(%arg0: i32) -> (i32, i32) {
    %c0_i32 = arith.constant 0 : i32
    %c0_i32_0 = arith.constant 0 : i32
    %c0_i32_1 = arith.constant 0 : i32
    return %c0_i32, %c0_i32_0 : i32, i32
  }
  func.func @transform_9(%arg0: i32) -> (i32, i32) {
    %c0_i32 = arith.constant 0 : i32
    %c0_i32_0 = arith.constant 0 : i32
    %c0_i32_1 = arith.constant 0 : i32
    return %c0_i32, %c0_i32_0 : i32, i32
  }
  func.func @transform_10(%arg0: i32) -> (i32, i32) {
    %c0_i32 = arith.constant 0 : i32
    %c0_i32_0 = arith.constant 0 : i32
    return %arg0, %c0_i32 : i32, i32
  }
  func.func @transform_11(%arg0: i32) -> (i32, i32) {
    %c0_i32 = arith.constant 0 : i32
    %c0_i32_0 = arith.constant 0 : i32
    return %arg0, %c0_i32 : i32, i32
  }
  func.func @transform_12(%arg0: i32) -> (i32, i32) {
    %c0_i32 = arith.constant 0 : i32
    %c0_i32_0 = arith.constant 0 : i32
    return %arg0, %c0_i32 : i32, i32
  }
}

</mosaic_0001>

<bundles_post_ra>
// kernel: u1_coupling_path_forward.1
= control target key start
LH: loop header
LB: loop body
LE: loop exit
PB: predicated region body
PF: predicated region fallthrough
CT: control target
= control target key end

     0   :  { %s1738_s21 = smov 0   ;;  %s2148_s0 = inlined_call_operand.vmem [shape: f32[64,128], index: 0, kind: input, shape index: {}]   ;;  %s2149_s1 = inlined_call_operand.vmem [shape: f32[64,128], index: 1, kind: input, shape index: {}]   ;;  %s2150_s2 = inlined_call_operand.vmem [shape: f32[1,128], index: 2, kind: input, shape index: {}]   ;;  %s2151_s3 = inlined_call_operand.vmem [shape: f32[128,32], index: 3, kind: input, shape index: {}]   ;;  %s2152_s4 = inlined_call_operand.vmem [shape: f32[1,32], index: 4, kind: input, shape index: {}]   ;;  %s2153_s5 = inlined_call_operand.vmem [shape: f32[32,128], index: 5, kind: input, shape index: {}]   ;;  %s2154_s6 = inlined_call_operand.vmem [shape: f32[32,128], index: 6, kind: input, shape index: {}]   ;;  %s2155_s7 = inlined_call_operand.vmem [shape: f32[1,128], index: 7, kind: input, shape index: {}]   ;;  %s2156_s8 = inlined_call_operand.vmem [shape: f32[1,128], index: 8, kind: input, shape index: {}]   ;;  %s2157_s9 = inlined_call_operand.vmem [shape: f32[1,32], index: 9, kind: input, shape index: {}]   ;;  %s2158_s10 = inlined_call_operand.vmem [shape: f32[64,128], index: 10, kind: output, shape index: {0}]   ;;  %s2159_s11 = inlined_call_operand.vmem [shape: f32[64,1], index: 11, kind: output, shape index: {1}]   ;;  %s2160_s12 = inlined_call_operand.vmem [shape: f32[64,128], index: 12, kind: output, shape index: {2}]  }
   0x1 LB: > { %s1380_s22 = sadd.s32 4294967295, %s1671_s21   ;;  %p1384_p0 = scmp.ge.s32.totalorder %s1671_s21, 1  ;;  %s1671_s21 = sphi %s1738_s21, %s23_s21  }
   0x2   : > { %p379_p1 = scmp.lt.s32.totalorder %s1671_s21, 3 }
   0x4   : > { %p380_p2 = pnand %p1384_p0, %p379_p1 }
   0x5   : > { %s1385_s27 = sshll.u32 (!%p380_p2), %s1380_s22, 2 }
   0x6   : > { %383 = sbr.rel (%p380_p2) target bundleno = 901 (0x385), region = 60  ;;  %p437_p3 = scmp.lt.s32.totalorder (!%p380_p2), %s1385_s27, 7 }
   0xb   : > { %v1749_v0 = vld [vmem:[%s2151_s3 + $0x78] sm:$0xff]  ;;  %v1754_v1 = vld [vmem:[%s2151_s3 + $0x70] sm:$0xff]  ;;  %v502_v2 = vlaneseq  ;;  %v1761_v3 = vld [vmem:[%s2151_s3 + $0x68] sm:$0xff]  ;;  %s2162_s27 = smov (!%p437_p3, %s1385_s27), 7  ;;  %vm614_vm0 = vcmask 261120   ;;  %vm1235_vm1 = vcmask 7168  }
   0xc   : > { %1501 = vmatprep.subr.mxu0 %v1749_v0  ;;  %v1768_v5 = vld [vmem:[%s2151_s3 + $0x60] sm:$0xff]  ;;  %s1771_s14 = sshll.u32 %s2162_s27, 3  ;;  %v1780_v8 = vld [vmem:[%s2151_s3 + $0x58] sm:$0xff]  ;;  %v1798_v12 = vld [vmem:[%s2151_s3 + $0x50] sm:$0xff] }
   0xd   : > { %1502 = vmatpush3.msra.mxu0 %v1749_v0  ;;  %v503_v4 = vshrl.u32 %v502_v2, 7  ;;  %v474_v7 = vld [vmem:[%s2150_s2] sm:$0x1]  ;;  %s1786_s22 = scalar_lea.vmem %s2148_s0, %s1771_s14  ;;  %v1807_v14 = vld [vmem:[%s2151_s3 + $0x48] sm:$0xff]  ;;  %v1826_v17 = vld [vmem:[%s2151_s3 + $0x38] sm:$0xff]  ;;  %s446_s18 = scalar_lea.vmem %s2149_s1, %s1771_s14 }
   0xe   : > { %1503 = vmatprep.subr.mxu0 %v1754_v1  ;;  %v475_v9 = vsub.f32 1.0, %v474_v7  ;;  %v1792_v11 = vld [vmem:[%s1786_s22] sm:$0xff]  ;;  %v1833_v18 = vld [vmem:[%s2151_s3 + $0x30] sm:$0xff]  ;;  %v1840_v19 = vld [vmem:[%s2151_s3 + $0x28] sm:$0xff]  ;;  %s452_s25 = scalar_lea.vmem %s2158_s10, %s1771_s14  ;;  %s458_s28 = scalar_lea.vmem %s2159_s11, %s1771_s14 }
   0xf   : > { %1504 = vmatpush3.msra.mxu0 %v1754_v1  ;;  %v504_v6 = vsub.s32 0, %v503_v4  ;;  %v1818_v16 = vld [vmem:[%s2151_s3 + $0x40] sm:$0xff]  ;;  %v1854_v21 = vld [vmem:[%s2151_s3 + $0x18] sm:$0xff]  ;;  %v1861_v22 = vld [vmem:[%s2151_s3 + $0x10] sm:$0xff]  ;;  %s464_s15 = scalar_lea.vmem %s2160_s12, %s1771_s14 }
  0x10   : > { %1505 = vmatprep.subr.mxu0 %v1761_v3  ;;  %v1847_v20 = vld [vmem:[%s2151_s3 + $0x20] sm:$0xff]  ;;  %v1868_v23 = vld [vmem:[%s2151_s3 + $0x8] sm:$0xff]  ;;  %v1875_v25 = vld [vmem:[%s1786_s22 + $0x10] sm:$0xff] }
  0x11   : > { %1506 = vmatpush3.msra.mxu0 %v1761_v3  ;;  %v1788_v10 = vrot.slane %v474_v7, %v504_v6  ;;  %v1800_v13 = vrot.slane %v475_v9, %v504_v6  ;;  %v1871_v24 = vld [vmem:[%s1786_s22 + $0x8] sm:$0xff]  ;;  %v1881_v26 = vld [vmem:[%s2151_s3] sm:$0xff]  ;;  %v1894_v29 = vld [vmem:[%s1786_s22 + $0x18] sm:$0xff] }
  0x12   : > { %1507 = vmatprep.subr.mxu0 %v1768_v5  ;;  %v1908_v31 = vld [vmem:[%s2153_s5 + $0x18] sm:$0xff]  ;;  %v1916_v33 = vld [vmem:[%s2153_s5 + $0x10] sm:$0xff]  ;;  %v1926_v35 = vld [vmem:[%s2153_s5 + $0x8] sm:$0xff] }
  0x13   : > { %1508 = vmatpush3.msra.mxu0 %v1768_v5  ;;  %v1811_v15 = vmul.f32 %v1800_v13, %v1792_v11  ;;  %v1886_v27 = vmul.f32 %v1800_v13, %v1871_v24  ;;  %v1891_v28 = vmul.f32 %v1800_v13, %v1875_v25  ;;  %v1901_v30 = vmul.f32 %v1800_v13, %v1894_v29  ;;  %v499_v32 = vld [vmem:[%s2154_s6 + $0x18] sm:$0xff]  ;;  %v498_v34 = vld [vmem:[%s2154_s6 + $0x10] sm:$0xff]  ;;  %v497_v36 = vld [vmem:[%s2154_s6 + $0x8] sm:$0xff] }
  0x14   : > { %1509 = vmatprep.subr.mxu0 %v1780_v8  ;;  %1553 = vmatprep.subr.mxu1 %v499_v32  ;;  %v1936_v37 = vld [vmem:[%s2153_s5] sm:$0xff] }
  0x15   : > { %1510 = vmatpush3.msra.mxu0 %v1780_v8  ;;  %1533 = vmatprep.mubr.f32.mxu0 %v1811_v15  ;;  %v496_v38 = vld [vmem:[%s2154_s6] sm:$0xff] }
  0x16   : > { %1511 = vmatprep.subr.mxu0 %v1798_v12  ;;  %1554 = vmatpush3.msra.mxu1 %v499_v32  ;;  %v1395_v39 = vld [vmem:[%s2152_s4] ss:$0 sm:$0xff] }
  0x17   : > { %1512 = vmatpush3.msra.mxu0 %v1798_v12  ;;  %1555 = vmatprep.subr.mxu1 %v498_v34  ;;  %v1396_v52 = vld [vmem:[%s2155_s7] ss:$0 sm:$0xff] }
  0x18   : > { %1513 = vmatprep.subr.mxu0 %v1807_v14  ;;  %1556 = vmatpush3.msra.mxu1 %v498_v34 }
  0x19   : > { %1514 = vmatpush3.msra.mxu0 %v1807_v14  ;;  %1557 = vmatprep.subr.mxu1 %v497_v36 }
  0x1a   : > { %1515 = vmatprep.subr.mxu0 %v1818_v16  ;;  %1558 = vmatpush3.msra.mxu1 %v497_v36 }
  0x1b   : > { %1516 = vmatpush3.msra.mxu0 %v1818_v16  ;;  %1559 = vmatprep.subr.mxu1 %v496_v38 }
  0x1c   : > { %1517 = vmatprep.subr.mxu0 %v1826_v17  ;;  %1560 = vmatpush3.msra.mxu1 %v496_v38 }
  0x1d   : > { %1518 = vmatpush3.msra.mxu0 %v1826_v17  ;;  %1595 = vmatprep.subr.msk.mxu1 %vm614_vm0, %v1749_v0 }
  0x1e   : > { %1519 = vmatprep.subr.mxu0 %v1833_v18 }
  0x1f   : > { %1520 = vmatpush3.msra.mxu0 %v1833_v18 }
  0x20   : > { %1521 = vmatprep.subr.mxu0 %v1840_v19 }
  0x21   : > { %1522 = vmatpush3.msra.mxu0 %v1840_v19 }
  0x22   : > { %1523 = vmatprep.subr.mxu0 %v1847_v20 }
  0x23   : > { %1524 = vmatpush3.msra.mxu0 %v1847_v20 }
  0x24   : > { %1525 = vmatprep.subr.mxu0 %v1854_v21 }
  0x25   : > { %1526 = vmatpush3.msra.mxu0 %v1854_v21 }
  0x26   : > { %1527 = vmatprep.subr.mxu0 %v1861_v22 }
  0x27   : > { %1528 = vmatpush3.msra.mxu0 %v1861_v22 }
  0x28   : > { %1529 = vmatprep.subr.mxu0 %v1868_v23 }
  0x29   : > { %1530 = vmatpush3.msra.mxu0 %v1868_v23 }
  0x2a   : > { %1531 = vmatprep.subr.mxu0 %v1881_v26 }
  0x2b   : > { %1532 = vmatpush3.msra.mxu0 %v1881_v26 }
  0x2c   : > { %1534 = vmatmul.mubr.f32.vlgmr.msra.gmra.mxu0 %v1886_v27  ;;  %1539 = vmatprep.subr.mxu0 %v1908_v31 }
  0x2d   : > { %1536 = vmatprep.mubr.f32.mxu0 %v1891_v28  ;;  %1540 = vmatpush3.msra.mxu0 %v1908_v31 }
  0x2e   : > { %1541 = vmatprep.subr.mxu0 %v1916_v33 }
  0x2f   : > { %1542 = vmatpush3.msra.mxu0 %v1916_v33 }
  0x30   : > { %1537 = vmatmul.mubr.f32.gmra.mxu0 %v1901_v30  ;;  %1543 = vmatprep.subr.mxu0 %v1926_v35 }
  0x31   : > { %1544 = vmatpush3.msra.mxu0 %v1926_v35 }
  0x32   : > { %1545 = vmatprep.subr.mxu0 %v1936_v37 }
  0x33   : > { %1546 = vmatpush3.msra.mxu0 %v1936_v37 }
  0x34   : > { %1567 = vmatprep.subr.mxu0 %v499_v32 }
  0xec   : > { %v1535_v40 = vpop.f32.mrf.mxu0 }
  0xed   : > { %v590_v41 = vadd.f32 %v1535_v40, %v1395_v39 }
  0xee   : > { %v584_v42 = vpop.f32.mrf.mxu0 }
  0xef   : > { %v585_v43 = vadd.f32 %v1395_v39, %v584_v42 }
  0xf0   : > { %v1538_v44 = vpop.f32.mrf.mxu0 }
  0xf1   : > { %1641 = vtanh.f32 %v585_v43  ;;  %v600_v45 = vadd.f32 %v1538_v44, %v1395_v39 }
  0xf2   : > { %1643 = vtanh.f32 %v590_v41  ;;  %v594_v46 = vpop.f32.mrf.mxu0  ;;  %v2063_v41 = vld [vmem:[%s446_s18 + $0x10] sm:$0xff] }
  0xf3   : > { %v595_v47 = vadd.f32 %v1395_v39, %v594_v46  ;;  %1645 = vtanh.f32 %v600_v45 }
  0xf5   : > { %1647 = vtanh.f32 %v595_v47 }
  0xfe   : > { %v1950_v48 = vpop.eup %1641 }
  0xff   : > { %v1952_v49 = vpop.eup %1643  ;;  %1547 = vmatprep.mubr.msk.f32.mxu0 %vm614_vm0, %v1950_v48  ;;  %1561 = vmatprep.mubr.msk.f32.mxu1 %vm614_vm0, %v1950_v48 }
 0x100   : > { %1548 = vmatmul.mubr.msk.f32.vlgmr.msra.gmra.mxu0 %vm614_vm0, %v1952_v49  ;;  %1562 = vmatmul.mubr.msk.f32.vlgmr.msra.gmra.mxu1 %vm614_vm0, %v1952_v49  ;;  %v1962_v50 = vpop.eup %1645 }
 0x101   : > { %1568 = vmatpush3.xpose.msra.mxu0 %v499_v32  ;;  %1596 = vmatpush3.xpose.msk.msra.mxu1 %vm614_vm0, %v1749_v0 }
 0x102   : > { %v1966_v51 = vpop.eup %1647  ;;  %1569 = vmatprep.subr.mxu0 %v498_v34  ;;  %1597 = vmatprep.subr.msk.mxu1 %vm614_vm0, %v1754_v1 }
 0x103   : > { %1550 = vmatprep.mubr.msk.f32.mxu0 %vm614_vm0, %v1966_v51  ;;  %1564 = vmatprep.mubr.msk.f32.mxu1 %vm614_vm0, %v1966_v51 }
 0x104   : > { %1551 = vmatmul.mubr.msk.f32.gmra.mxu0 %vm614_vm0, %v1962_v50  ;;  %1565 = vmatmul.mubr.msk.f32.gmra.mxu1 %vm614_vm0, %v1962_v50 }
 0x105   : > { %1570 = vmatpush3.xpose.msra.mxu0 %v498_v34  ;;  %1598 = vmatpush3.xpose.msk.msra.mxu1 %vm614_vm0, %v1754_v1  ;;  %v1401_v34 = vld [vmem:[%s2156_s8] ss:$0 sm:$0xff] }
 0x106   : > { %1571 = vmatprep.subr.mxu0 %v497_v36  ;;  %1599 = vmatprep.subr.msk.mxu1 %vm614_vm0, %v1761_v3 }
 0x109   : > { %1572 = vmatpush3.xpose.msra.mxu0 %v497_v36  ;;  %1600 = vmatpush3.xpose.msk.msra.mxu1 %vm614_vm0, %v1761_v3 }
 0x10a   : > { %1573 = vmatprep.subr.mxu0 %v496_v38  ;;  %1601 = vmatprep.subr.msk.mxu1 %vm614_vm0, %v1768_v5 }
 0x10d   : > { %1574 = vmatpush3.xpose.msra.mxu0 %v496_v38  ;;  %1602 = vmatpush3.xpose.msk.msra.mxu1 %vm614_vm0, %v1768_v5  ;;  %v2060_v38 = vld [vmem:[%s446_s18 + $0x18] sm:$0xff] }
 0x10e   : > { %1581 = vmatprep.subr.mxu0 %v1908_v31  ;;  %1603 = vmatprep.subr.msk.mxu1 %vm614_vm0, %v1780_v8 }
 0x111   : > { %1604 = vmatpush3.xpose.msk.msra.mxu1 %vm614_vm0, %v1780_v8 }
 0x112   : > { %1605 = vmatprep.subr.msk.mxu1 %vm614_vm0, %v1798_v12 }
 0x115   : > { %1606 = vmatpush3.xpose.msk.msra.mxu1 %vm614_vm0, %v1798_v12 }
 0x116   : > { %1607 = vmatprep.subr.msk.mxu1 %vm614_vm0, %v1807_v14 }
 0x119   : > { %1608 = vmatpush3.xpose.msk.msra.mxu1 %vm614_vm0, %v1807_v14 }
 0x11a   : > { %1609 = vmatprep.subr.msk.mxu1 %vm614_vm0, %v1818_v16 }
 0x11d   : > { %1610 = vmatpush3.xpose.msk.msra.mxu1 %vm614_vm0, %v1818_v16 }
 0x11e   : > { %1611 = vmatprep.subr.msk.mxu1 %vm614_vm0, %v1826_v17 }
 0x121   : > { %1612 = vmatpush3.xpose.msk.msra.mxu1 %vm614_vm0, %v1826_v17 }
 0x122   : > { %1613 = vmatprep.subr.msk.mxu1 %vm614_vm0, %v1833_v18 }
 0x125   : > { %1614 = vmatpush3.xpose.msk.msra.mxu1 %vm614_vm0, %v1833_v18  ;;  %v2048_v18 = vld [vmem:[%s446_s18] sm:$0xff] }
 0x126   : > { %1615 = vmatprep.subr.msk.mxu1 %vm614_vm0, %v1840_v19 }
 0x129   : > { %1616 = vmatpush3.xpose.msk.msra.mxu1 %vm614_vm0, %v1840_v19  ;;  %v2050_v19 = vld [vmem:[%s446_s18 + $0x8] sm:$0xff] }
 0x12a   : > { %1617 = vmatprep.subr.msk.mxu1 %vm614_vm0, %v1847_v20  ;;  %v873_v32 = vmul.f32 %v1788_v10, %v2050_v19 }
 0x12d   : > { %1618 = vmatpush3.xpose.msk.msra.mxu1 %vm614_vm0, %v1847_v20 }
 0x12e   : > { %1619 = vmatprep.subr.msk.mxu1 %vm614_vm0, %v1854_v21 }
 0x131   : > { %1620 = vmatpush3.xpose.msk.msra.mxu1 %vm614_vm0, %v1854_v21 }
 0x132   : > { %1621 = vmatprep.subr.msk.mxu1 %vm614_vm0, %v1861_v22 }
 0x135   : > { %1622 = vmatpush3.xpose.msk.msra.mxu1 %vm614_vm0, %v1861_v22 }
 0x136   : > { %1623 = vmatprep.subr.msk.mxu1 %vm614_vm0, %v1868_v23 }
 0x139   : > { %1624 = vmatpush3.xpose.msk.msra.mxu1 %vm614_vm0, %v1868_v23  ;;  %v872_v23 = vmul.f32 %v1788_v10, %v2048_v18 }
 0x13a   : > { %1625 = vmatprep.subr.msk.mxu1 %vm614_vm0, %v1881_v26 }
 0x13d   : > { %1626 = vmatpush3.xpose.msk.msra.mxu1 %vm614_vm0, %v1881_v26 }
 0x1c0   : > { %v1549_v53 = vpop.f32.mrf.mxu0  ;;  %v1563_v17 = vpop.f32.mrf.mxu1 }
 0x1c1   : > { %v699_v54 = vadd.f32 %v1549_v53, %v1396_v52  ;;  %v801_v46 = vadd.f32 %v1563_v17, %v1401_v34 }
 0x1c2   : > { %v693_v55 = vpop.f32.mrf.mxu0  ;;  %v795_v21 = vpop.f32.mrf.mxu1 }
 0x1c3   : > { %v719_v56 = vmul.f32 %v1788_v10, %v699_v54  ;;  %v694_v57 = vadd.f32 %v1396_v52, %v693_v55  ;;  %v796_v43 = vadd.f32 %v1401_v34, %v795_v21  ;;  %v851_v21 = vmul.f32 %v1952_v49, %v1952_v49 }
 0x1c4   : > { %v1552_v58 = vpop.f32.mrf.mxu0  ;;  %v1566_v36 = vpop.f32.mrf.mxu1 }
 0x1c5   : > { %v820_v59 = vmul.f32 1.442695, %v719_v56  ;;  %v877_v60 = vsub.f32 0.0, %v719_v56  ;;  %v718_v61 = vmul.f32 %v1788_v10, %v694_v57  ;;  %v709_v62 = vadd.f32 %v1552_v58, %v1396_v52 }
 0x1c6   : > { %v703_v63 = vpop.f32.mrf.mxu0  ;;  %v805_v55 = vpop.f32.mrf.mxu1  ;;  %v874_v57 = vmul.f32 %v1788_v10, %v2063_v41 }
 0x1c7   : > { %1649 = vpow2.f32 %v820_v59  ;;  %v882_v0 = vmul.f32 1.442695, %v877_v60  ;;  %v818_v1 = vmul.f32 1.442695, %v718_v61  ;;  %v876_v2 = vsub.f32 0.0, %v718_v61  ;;  %842 = vadd.xlane.f32.xlu0 %v718_v61 }
 0x1c8   : > { %v721_v3 = vmul.f32 %v1788_v10, %v709_v62  ;;  %v704_v4 = vadd.f32 %v1396_v52, %v703_v63  ;;  %v875_v52 = vmul.f32 %v1788_v10, %v2060_v38  ;;  %v814_v61 = vmul.f32 %v796_v43, %v1788_v10 }
 0x1c9   : > { %1651 = vpow2.f32 %v882_v0  ;;  %v880_v5 = vmul.f32 1.442695, %v876_v2  ;;  %v806_v2 = vadd.f32 %v1401_v34, %v805_v55 }
 0x1ca   : > { %1653 = vpow2.f32 %v818_v1  ;;  %v824_v6 = vmul.f32 1.442695, %v721_v3  ;;  %v879_v7 = vsub.f32 0.0, %v721_v3  ;;  %v720_v8 = vmul.f32 %v1788_v10, %v704_v4 }
 0x1cb   : > { %1655 = vpow2.f32 %v880_v5  ;;  %844 = vadd.xlane.f32.xlu0 %v719_v56  ;;  %v815_v1 = vmul.f32 %v801_v46, %v1788_v10 }
 0x1cc   : > { %1657 = vpow2.f32 %v824_v6  ;;  %v886_v9 = vmul.f32 1.442695, %v879_v7  ;;  %v822_v12 = vmul.f32 1.442695, %v720_v8  ;;  %v878_v14 = vsub.f32 0.0, %v720_v8  ;;  %846 = vadd.xlane.f32.xlu1 %v720_v8 }
 0x1cd   : > { %v892_v6 = vmul.f32 %v872_v23, %v1792_v11 }
 0x1ce   : > { %1659 = vpow2.f32 %v886_v9  ;;  %v884_v16 = vmul.f32 1.442695, %v878_v14 }
 0x1cf   : > { %1661 = vpow2.f32 %v822_v12 }
 0x1d0   : > { %1663 = vpow2.f32 %v884_v16  ;;  %848 = vadd.xlane.f32.xlu1 %v721_v3 }
 0x1d4   : > { %v1650_v20 = vpop.eup %1649 }
 0x1d5   : > { %v827_v22 = vmul.f32 %v1650_v20, %v1871_v24 }
 0x1d6   : > { %v1652_v26 = vpop.eup %1651 }
 0x1d7   : > { %v1654_v39 = vpop.eup %1653  ;;  %v831_v40 = vmul.f32 %v827_v22, %v1788_v10  ;;  %v2072_v56 = vmul.f32 %v1652_v26, %v873_v32 }
 0x1d8   : > { %v1656_v42 = vpop.eup %1655  ;;  %v826_v44 = vmul.f32 %v1654_v39, %v1792_v11 }
 0x1d9   : > { %v1658_v45 = vpop.eup %1657  ;;  %v2066_v47 = vmul.f32 %v1656_v42, %v872_v23  ;;  %v835_v59 = vadd.f32 %v831_v40, %v1886_v27  ;;  %v852_v23 = vmul.f32 %v1966_v51, %v1966_v51 }
 0x1da   : > { %v830_v53 = vmul.f32 %v826_v44, %v1788_v10  ;;  %v829_v54 = vmul.f32 %v1658_v45, %v1894_v29 }
 0x1db   : > { %v1660_v58 = vpop.eup %1659  ;;  %1575 = vmatprep.mubr.f32.mxu0 %v2066_v47  ;;  %v839_v7 = vadd.f32 %v835_v59, %v815_v1  ;;  %v856_v42 = vsub.f32 1.0, %v852_v23 }
 0x1dc   : > { %v1662_v60 = vpop.eup %1661  ;;  %v834_v62 = vadd.f32 %v830_v53, %v1811_v15  ;;  %v833_v63 = vmul.f32 %v829_v54, %v1788_v10  ;;  %1576 = vmatmul.mubr.f32.vlgmr.msra.gmra.mxu0 %v2072_v56  ;;  %v2089_v3 = vmul.f32 %v1660_v58, %v875_v52  ;;  %v811_v15 = vadd.f32 %v1566_v36, %v1401_v34  ;;  %v1406_v36 = vld [vmem:[%s2157_s9] ss:$0 sm:$0xff] }
 0x1dd   : > { %v1664_v0 = vpop.eup %1663  ;;  %v828_v27 = vmul.f32 %v1662_v60, %v1875_v25  ;;  %1582 = vmatpush3.xpose.msra.mxu0 %v1908_v31  ;;  %1232 = vst [vmem:[%s452_s25 + $0x8] sm:$0xff] %v839_v7  ;;  %v816_v31 = vmul.f32 %v806_v2, %v1788_v10  ;;  %v853_v34 = vmul.f32 %v1962_v50, %v1962_v50 }
 0x1de   : > { %v838_v4 = vadd.f32 %v834_v62, %v814_v61  ;;  %v2091_v5 = vmul.f32 %v1664_v0, %v874_v57  ;;  %1583 = vmatprep.subr.mxu0 %v1916_v33  ;;  %v837_v9 = vadd.f32 %v833_v63, %v1901_v30  ;;  %v817_v14 = vmul.f32 %v811_v15, %v1788_v10 }
 0x1df   : > { %v832_v8 = vmul.f32 %v828_v27, %v1788_v10  ;;  %v894_v10 = vmul.f32 %v874_v57, %v1875_v25  ;;  %v895_v30 = vmul.f32 %v875_v52, %v1894_v29  ;;  %v850_v29 = vmul.f32 %v1950_v48, %v1950_v48 }
 0x1e0   : > { %1231 = vst [vmem:[%s452_s25] sm:$0xff] %v838_v4  ;;  %1578 = vmatprep.mubr.f32.mxu0 %v2091_v5  ;;  %v841_v16 = vadd.f32 %v837_v9, %v817_v14  ;;  %v857_v49 = vsub.f32 1.0, %v853_v34  ;;  %v866_v55 = vmul.f32 %v1406_v36, %v856_v42 }
 0x1e1   : > { %v836_v12 = vadd.f32 %v832_v8, %v1891_v28  ;;  %1579 = vmatmul.mubr.f32.gmra.mxu0 %v2089_v3  ;;  %v893_v28 = vmul.f32 %v873_v32, %v1871_v24  ;;  %v854_v22 = vsub.f32 1.0, %v850_v29  ;;  %v855_v32 = vsub.f32 1.0, %v851_v21 }
 0x1e2   : > { %1584 = vmatpush3.xpose.msra.mxu0 %v1916_v33  ;;  %1589 = vmatprep.mubr.f32.mxu0 %v892_v6  ;;  %1234 = vst [vmem:[%s452_s25 + $0x18] sm:$0xff] %v841_v16  ;;  %v867_v50 = vmul.f32 %v1406_v36, %v857_v49  ;;  %v870_v63 = vsub.f32 0.0, %v866_v55 }
 0x1e3   : > { %v840_v11 = vadd.f32 %v836_v12, %v816_v31  ;;  %1585 = vmatprep.subr.mxu0 %v1926_v35  ;;  %v864_v48 = vmul.f32 %v1406_v36, %v854_v22  ;;  %v865_v43 = vmul.f32 %v1406_v36, %v855_v32 }
 0x1e4   : > { %v871_v1 = vsub.f32 0.0, %v867_v50 }
 0x1e5   : > { %1233 = vst [vmem:[%s452_s25 + $0x10] sm:$0xff] %v840_v11  ;;  %v868_v51 = vsub.f32 0.0, %v864_v48  ;;  %v869_v57 = vsub.f32 0.0, %v865_v43 }
 0x1e6   : > { %1586 = vmatpush3.xpose.msra.mxu0 %v1926_v35 }
 0x1e7   : > { %1587 = vmatprep.subr.mxu0 %v1936_v37 }
 0x1ea   : > { %1588 = vmatpush3.xpose.msra.mxu0 %v1936_v37 }
 0x1ed   : > { %1590 = vmatmul.mubr.f32.vlgmr.msra.gmra.mxu0 %v893_v28 }
 0x1ee   : > { %1592 = vmatprep.mubr.f32.mxu0 %v894_v10 }
 0x1f1   : > { %1593 = vmatmul.mubr.f32.gmra.mxu0 %v895_v30 }
 0x250   : > { %v843_v33 = vpop.xlane.xlu0 %842 }
 0x251   : > { %1236 = vst.msk [vmem:[%s458_s28] sm:$0xff] %vm1235_vm1, %v843_v33 }
 0x254   : > { %v845_v35 = vpop.xlane.xlu0 %844 }
 0x255   : > { %v847_v17 = vpop.xlane.xlu1 %846  ;;  %1237 = vst.msk [vmem:[%s458_s28 + $0x8] sm:$0xff] %vm1235_vm1, %v845_v35 }
 0x256   : > { %1238 = vst.msk [vmem:[%s458_s28 + $0x10] sm:$0xff] %vm1235_vm1, %v847_v17 }
 0x259   : > { %v849_v24 = vpop.xlane.xlu1 %848 }
 0x25a   : > { %1239 = vst.msk [vmem:[%s458_s28 + $0x18] sm:$0xff] %vm1235_vm1, %v849_v24 }
 0x29c   : > { %v1577_v37 = vpop.f32.mrf.mxu0 }
 0x29e   : > { %v962_v25 = vpop.f32.mrf.mxu0 }
 0x2a1   : > { %v1580_v20 = vpop.f32.mrf.mxu0 }
 0x2a3   : > { %v972_v26 = vpop.f32.mrf.mxu0 }
 0x2ad   : > { %v1591_v39 = vpop.f32.mrf.mxu0 }
 0x2ae   : > { %v1053_v40 = vadd.f32 %v1591_v39, %v1577_v37 }
 0x2af   : > { %v1047_v44 = vpop.f32.mrf.mxu0 }
 0x2b0   : > { %v1048_v45 = vadd.f32 %v1047_v44, %v962_v25  ;;  %v1067_v46 = vmul.f32 %v1053_v40, %v855_v32 }
 0x2b1   : > { %v1594_v52 = vpop.f32.mrf.mxu0 }
 0x2b2   : > { %v1066_v53 = vmul.f32 %v1048_v45, %v854_v22  ;;  %v1063_v54 = vadd.f32 %v1594_v52, %v1580_v20  ;;  %v1071_v61 = vsub.f32 %v869_v57, %v1067_v46 }
 0x2b3   : > { %v1057_v58 = vpop.f32.mrf.mxu0 }
 0x2b4   : > { %v1070_v59 = vsub.f32 %v868_v51, %v1066_v53  ;;  %v1058_v60 = vadd.f32 %v1057_v58, %v972_v26  ;;  %v1069_v62 = vmul.f32 %v1063_v54, %v857_v49 }
 0x2b6   : > { %v1068_v0 = vmul.f32 %v1058_v60, %v856_v42  ;;  %1627 = vmatprep.mubr.msk.f32.mxu1 %vm614_vm0, %v1070_v59  ;;  %v1073_v27 = vsub.f32 %v871_v1, %v1069_v62 }
 0x2b7   : > { %1628 = vmatmul.mubr.msk.f32.vlgmr.msra.gmra.mxu1 %vm614_vm0, %v1071_v61 }
 0x2b8   : > { %v1072_v2 = vsub.f32 %v870_v63, %v1068_v0 }
 0x2ba   : > { %1630 = vmatprep.mubr.msk.f32.mxu1 %vm614_vm0, %v1072_v2 }
 0x2bb   : > { %1631 = vmatmul.mubr.msk.f32.gmra.mxu1 %vm614_vm0, %v1073_v27 }
 0x377   : > { %v1629_v4 = vpop.f32.mrf.mxu1 }
 0x378   : > { %v1220_v15 = vadd.f32 %v1629_v4, %v2050_v19 }
 0x379   : > { %v1200_v6 = vpop.f32.mrf.mxu1 }
 0x37a   : > { %v1219_v7 = vadd.f32 %v1200_v6, %v2048_v18  ;;  %v1224_v8 = vmul.f32 %v1220_v15, %v1800_v13 }
 0x37b   : > { %v1632_v9 = vpop.f32.mrf.mxu1 }
 0x37c   : > { %v1223_v31 = vmul.f32 %v1219_v7, %v1800_v13  ;;  %v1222_v12 = vadd.f32 %v1632_v9, %v2060_v38  ;;  %v1228_v19 = vadd.f32 %v1224_v8, %v2072_v56 }
 0x37d   : > { %v1210_v14 = vpop.f32.mrf.mxu1 }
 0x37e   : > { %v1227_v11 = vadd.f32 %v1223_v31, %v2066_v47  ;;  %v1221_v16 = vadd.f32 %v1210_v14, %v2063_v41  ;;  %v1226_v18 = vmul.f32 %v1222_v12, %v1800_v13  ;;  %1241 = vst [vmem:[%s464_s15 + $0x8] sm:$0xff] %v1228_v19 }
 0x380   : > { %1240 = vst [vmem:[%s464_s15] sm:$0xff] %v1227_v11  ;;  %v1225_v28 = vmul.f32 %v1221_v16, %v1800_v13  ;;  %v1230_v38 = vadd.f32 %v1226_v18, %v2089_v3 }
 0x382   : > { %v1229_v10 = vadd.f32 %v1225_v28, %v2091_v5  ;;  %1243 = vst [vmem:[%s464_s15 + $0x18] sm:$0xff] %v1230_v38 }
 0x384   : > { %1242 = vst [vmem:[%s464_s15 + $0x10] sm:$0xff] %v1229_v10 }
 0x385 PF: > { %s23_s21 = sadd.s32 1, %s1671_s21  }
 0x386   : > { %p20_p4 = scmp.ge.s32.totalorder %s23_s21, 4  }
 0x388   :  { %22 = sbr.rel (!%p20_p4) target bundleno = 1 (0x1), region = 117 }

</bundles_post_ra>
